<compile_context>
chip_gen: v7x
topology: tpu7x:2x2x1
jax: 0.10.0
libtpu: 0.0.40
codegen_flags: <defaults>
</compile_context>

<pallas_src>
import jax
import jax.numpy as jnp
from jax import lax
from jax.experimental import pallas as pl
from jax.experimental.pallas import tpu as pltpu


# ----------------------------------------------------------------------------- helpers
def _round_up(x: int, m: int) -> int:
    return ((x + m - 1) // m) * m


def _vmem_budget():
    """Generation-aware VMEM budget (for tile sizing) and Mosaic vmem limit."""
    try:
        cap = int(pltpu.get_tpu_info().vmem_capacity_bytes)
    except Exception:
        cap = 64 << 20  # assume the smallest (v7x) physical VMEM if query fails
    budget = min(cap // 3, 40 << 20)   # working set for tiles (v7x ~21 MiB, v5e/v6e 40 MiB)
    limit = min(cap // 2, 64 << 20)    # vmem_limit_bytes handed to the compiler
    return budget, limit


def _pick_tiles(B: int, D: int, C: int, in_itemsize: int, out_itemsize: int,
                budget: int, sub: int):
    """Pick (tm, tk, c_pad).

    tm: batch tile (multiple of `sub`, <= 8192, sized so the double-buffered
        x/out tiles + f32 accumulator + resident weight fit `budget`).
    tk: input-feature tile (== D unless the whole weight can't live in VMEM,
        then a multiple of 128 and the wrapper zero-pads D).
    """
    c_pad = _round_up(C, 128)

    # K tiling only when the (double-buffered) transposed weight can't share
    # VMEM with a reasonable batch tile.
    if 2 * D * c_pad * in_itemsize <= budget // 2:
        tk = D
    else:
        tk = ((budget // 2) // (2 * c_pad * in_itemsize)) // 128 * 128
        tk = max(128, min(2048, tk))

    # Fixed VMEM: weight (2 buffers; index_map is grid-k only) + bias tile.
    w_bytes = 2 * tk * c_pad * in_itemsize + 8 * 128 * 4
    # Per batch-row VMEM: x (2 bufs), out (2 bufs, lane-padded to c_pad), f32 acc.
    per_row = 2 * tk * in_itemsize + 2 * c_pad * out_itemsize + c_pad * 4

    tm = (budget - w_bytes - (1 << 20)) // per_row
    tm = max(sub, min(8192, (tm // sub) * sub))
    # Never exceed the batch; keep >=2 grid steps so v7x's two TensorCores
    # (dimension_semantics="parallel") both get work whenever B allows it.
    tm = min(tm, _round_up(B, sub), max(sub, _round_up(pl.cdiv(B, 2), sub)))
    return tm, tk, c_pad


# ----------------------------------------------------------------------------- kernel
def _linear_kernel(x_ref, w_ref, b_ref, o_ref, acc_ref):
    # x_ref: (TM, TK)  w_ref: (TK, C_pad)  b_ref: (1, C)  o_ref: (TM, C)
    # acc_ref: (TM, C_pad) float32 scratch (persists across the K grid axis).
    k = pl.program_id(1)

    @pl.when(k == 0)
    def _():
        acc_ref[...] = jnp.zeros_like(acc_ref)

    acc_ref[...] += jnp.dot(x_ref[...], w_ref[...],
                            preferred_element_type=jnp.float32)

    @pl.when(k == pl.num_programs(1) - 1)
    def _():
        c = o_ref.shape[-1]
        # Store only the C valid class lanes (masked vst): unpadded HBM writeback.
        o_ref[...] = (acc_ref[:, :c] + b_ref[...].astype(jnp.float32)
                      ).astype(o_ref.dtype)


# ----------------------------------------------------------------------------- wrapper
def stacking_ensemble_forward(x, weight, bias, *, compute_dtype=None,
                              force_pallas: bool = False):
    """Equivalent of StackingEnsemble.forward.

    x:      (B, D)  float32
    weight: (C, D)  float32   (PyTorch nn.Linear layout)
    bias:   (C,)    float32
    compute_dtype: optional (e.g. jnp.bfloat16) matmul-input dtype; accumulation
                   stays float32, output keeps x.dtype.
    returns (B, C)  in x.dtype
    """
    B, D = x.shape
    C = weight.shape[0]
    out_dtype = x.dtype

    # Tiny meta-learner calls are pure pallas_call fixed overhead: let XLA's
    # fused dot handle them unless the caller insists on the kernel path.
    if not force_pallas and (B * D < 128 * 256):
        return x @ weight.T + bias

    in_dtype = jnp.dtype(compute_dtype) if compute_dtype is not None else x.dtype
    in_itemsize = in_dtype.itemsize
    sub = 8 if in_itemsize >= 4 else (16 if in_itemsize == 2 else 32)

    budget, vmem_limit = _vmem_budget()
    tm, tk, c_pad = _pick_tiles(B, D, C, in_itemsize, out_dtype.itemsize,
                                budget, sub)

    # One-time weight prep in the wrapper (weight is tiny): pad classes to a
    # lane-dense multiple of 128 for the MXU and transpose to (D, C_pad) so the
    # kernel contracts (((1,),(0,))) with no per-grid-step transpose.
    w_t = jnp.pad(weight, ((0, c_pad - C), (0, 0))).T      # (D, C_pad)
    b2 = bias.reshape(1, C)                                # bias stays unpadded

    x_in = x
    if in_dtype != x.dtype:
        x_in = x.astype(in_dtype)
        w_t = w_t.astype(in_dtype)

    # Rare fallback for very large input_size: tile K and zero-pad D so the
    # partial last K block never folds garbage into the accumulator.
    d_pad = D
    if tk != D:
        d_pad = _round_up(D, tk)
        # TODO(synk): the K-dim zero-pad of x costs one extra HBM round trip;
        # only taken when the whole weight cannot fit in VMEM.
        x_in = jnp.pad(x_in, ((0, 0), (0, d_pad - D)))
        w_t = jnp.pad(w_t, ((0, d_pad - D), (0, 0)))

    grid_m = pl.cdiv(B, tm)       # ragged last batch block handled by Pallas
    grid_k = d_pad // tk

    cost = pl.CostEstimate(
        flops=2 * B * D * C,
        transcendentals=0,
        bytes_accessed=(B * D + D * c_pad) * in_itemsize
        + B * C * out_dtype.itemsize)

    # TODO(synk): pipeline_mode=pl.Buffered(1) on the grid-invariant weight/bias
    # specs would free one buffer of VMEM; the budget above already accounts for
    # the default double buffer, so this is a pure headroom optimization.
    out = pl.pallas_call(
        _linear_kernel,
        out_shape=jax.ShapeDtypeStruct((B, C), out_dtype),
        grid_spec=pltpu.PrefetchScalarGridSpec(
            num_scalar_prefetch=0,
            grid=(grid_m, grid_k),
            in_specs=[
                pl.BlockSpec((tm, tk), lambda i, k: (i, k)),      # x: batch x K tiles
                pl.BlockSpec((tk, c_pad), lambda i, k: (k, 0)),   # weight: K tiles only
                pl.BlockSpec((1, C), lambda i, k: (0, 0)),        # bias: resident
            ],
            out_specs=pl.BlockSpec((tm, C), lambda i, k: (i, 0)), # unpadded output
            scratch_shapes=[pltpu.VMEM((tm, c_pad), jnp.float32)],
        ),
        compiler_params=pltpu.CompilerParams(
            dimension_semantics=("parallel", "arbitrary"),
            vmem_limit_bytes=vmem_limit),
        cost_estimate=cost,
    )(x_in, w_t, b2)
    return out


# ----------------------------------------------------------------------------- demo
if __name__ == "__main__":
    key = jax.random.PRNGKey(0)
    kx, kw, kb, kx2, kx3 = jax.random.split(key, 5)

    batch = 8
    input_size = 32
    num_classes = 10

    x = jax.random.normal(kx, (batch, input_size), dtype=jnp.float32)
    bound = 1.0 / (input_size ** 0.5)
    weight = jax.random.uniform(kw, (num_classes, input_size),
                                minval=-bound, maxval=bound, dtype=jnp.float32)
    bias = jax.random.uniform(kb, (num_classes,),
                              minval=-bound, maxval=bound, dtype=jnp.float32)
    ref = x @ weight.T + bias

    # Force the Pallas path even at this tiny size so the kernel is exercised.
    out = jax.block_until_ready(
        stacking_ensemble_forward(x, weight, bias, force_pallas=True))
    assert out.shape == (batch, num_classes)
    assert jnp.allclose(out, ref, atol=1e-5, rtol=1e-5)

    # Batch that is not a multiple of the tile -> exercises the cdiv grid /
    # partial last block (no wrapper-side x padding).
    x2 = jax.random.normal(kx2, (20, input_size), dtype=jnp.float32)
    out2 = jax.block_until_ready(
        stacking_ensemble_forward(x2, weight, bias, force_pallas=True))
    ref2 = x2 @ weight.T + bias
    assert out2.shape == (20, num_classes)
    assert jnp.allclose(out2, ref2, atol=1e-5, rtol=1e-5)

    # Optional bf16-input path (f32 accumulation) for v6e/v7x bandwidth.
    x3 = jax.random.normal(kx3, (64, input_size), dtype=jnp.float32)
    out3 = jax.block_until_ready(
        stacking_ensemble_forward(x3, weight, bias,
                                  compute_dtype=jnp.bfloat16, force_pallas=True))
    ref3 = x3 @ weight.T + bias
    assert out3.shape == (64, num_classes)
    assert jnp.allclose(out3, ref3, atol=5e-2, rtol=5e-2)

    # Plain-XLA fallback for tiny problems also matches.
    out4 = jax.block_until_ready(stacking_ensemble_forward(x, weight, bias))
    assert jnp.allclose(out4, ref, atol=1e-5, rtol=1e-5)

    print("KERNEL_OK")
</pallas_src>

<mosaic_0001>
module attributes {stable_mosaic.version = 11 : i64} {
  func.func @_linear_kernel(%arg0: i32, %arg1: i32, %arg2: memref<8x32xf32, #tpu.memory_space<vmem>>, %arg3: memref<32x128xf32, #tpu.memory_space<vmem>>, %arg4: memref<1x10xf32, #tpu.memory_space<vmem>>, %arg5: memref<8x10xf32, #tpu.memory_space<vmem>>, %arg6: memref<8x128xf32, #tpu.memory_space<vmem>>) attributes {dimension_semantics = [#tpu.dimension_semantics<parallel>, #tpu.dimension_semantics<arbitrary>], iteration_bounds = array<i64: 1, 1>, scalar_prefetch = 0 : i64, scratch_operands = 1 : i64, tpu.core_type = #tpu.core_type<tc>, window_params = [{transform_indices = @transform_0, window_bounds = array<i64: 8, 32>}, {transform_indices = @transform_1, window_bounds = array<i64: 32, 128>}, {pipeline_mode = #tpu.pipeline_mode<synchronous>, transform_indices = @transform_2, window_bounds = array<i64: 1, 10>}, {transform_indices = @transform_3, window_bounds = array<i64: 8, 10>}]} {
    %c0_i32 = arith.constant 0 : i32
    %0 = arith.cmpi eq, %arg1, %c0_i32 : i32
    %1 = arith.extui %0 : i1 to i32
    %c0_i32_0 = arith.constant 0 : i32
    %2 = arith.cmpi ne, %1, %c0_i32_0 : i32
    scf.if %2 {
      %cst_10 = arith.constant 0.000000e+00 : f32
      %12 = vector.broadcast %cst_10 : f32 to vector<8x128xf32>
      %c0_11 = arith.constant 0 : index
      %c0_12 = arith.constant 0 : index
      %13 = vector.load %arg6[%c0_11, %c0_12] : memref<8x128xf32, #tpu.memory_space<vmem>>, vector<8x128xf32>
      tpu.vector_store %arg6[%c0_11, %c0_12], %12 {strides = array<i32>} : memref<8x128xf32, #tpu.memory_space<vmem>>, vector<8x128xf32>,
    } else {
    }
    %c0 = arith.constant 0 : index
    %c0_1 = arith.constant 0 : index
    %3 = vector.load %arg6[%c0, %c0_1] : memref<8x128xf32, #tpu.memory_space<vmem>>, vector<8x128xf32>
    %c0_2 = arith.constant 0 : index
    %c0_3 = arith.constant 0 : index
    %4 = vector.load %arg2[%c0_2, %c0_3] : memref<8x32xf32, #tpu.memory_space<vmem>>, vector<8x32xf32>
    %c0_4 = arith.constant 0 : index
    %c0_5 = arith.constant 0 : index
    %5 = vector.load %arg3[%c0_4, %c0_5] : memref<32x128xf32, #tpu.memory_space<vmem>>, vector<32x128xf32>
    %cst = arith.constant dense<0.000000e+00> : vector<8x128xf32>
    %6 = tpu.matmul %4, %5, %cst {dimension_numbers = #tpu.dot_dimension_numbers<[1], [0], [0], [1], [0, 0, 1, 1], [], []>} : vector<8x32xf32>, vector<32x128xf32>, vector<8x128xf32> -> vector<8x128xf32>
    %7 = arith.addf %3, %6 : vector<8x128xf32>
    %c0_6 = arith.constant 0 : index
    %c0_7 = arith.constant 0 : index
    %8 = vector.load %arg6[%c0_6, %c0_7] : memref<8x128xf32, #tpu.memory_space<vmem>>, vector<8x128xf32>
    tpu.vector_store %arg6[%c0_6, %c0_7], %7 {strides = array<i32>} : memref<8x128xf32, #tpu.memory_space<vmem>>, vector<8x128xf32>,
    %c0_i32_8 = arith.constant 0 : i32
    %9 = arith.cmpi eq, %arg1, %c0_i32_8 : i32
    %10 = arith.extui %9 : i1 to i32
    %c0_i32_9 = arith.constant 0 : i32
    %11 = arith.cmpi ne, %10, %c0_i32_9 : i32
    scf.if %11 {
      %c0_10 = arith.constant 0 : index
      %c0_11 = arith.constant 0 : index
      %12 = vector.load %arg6[%c0_10, %c0_11] : memref<8x128xf32, #tpu.memory_space<vmem>>, vector<8x10xf32>
      %c0_12 = arith.constant 0 : index
      %c0_13 = arith.constant 0 : index
      %13 = vector.load %arg4[%c0_12, %c0_13] : memref<1x10xf32, #tpu.memory_space<vmem>>, vector<1x10xf32>
      %14 = vector.broadcast %13 : vector<1x10xf32> to vector<8x10xf32>
      %15 = arith.addf %12, %14 : vector<8x10xf32>
      %c0_14 = arith.constant 0 : index
      %c0_15 = arith.constant 0 : index
      %16 = vector.load %arg5[%c0_14, %c0_15] : memref<8x10xf32, #tpu.memory_space<vmem>>, vector<8x10xf32>
      tpu.vector_store %arg5[%c0_14, %c0_15], %15 {strides = array<i32>} : memref<8x10xf32, #tpu.memory_space<vmem>>, vector<8x10xf32>,
    } else {
    }
    return
  }
  func.func @transform_0(%arg0: i32, %arg1: i32) -> (i32, i32) {
    %c0_i32 = arith.constant 0 : i32
    return %arg0, %arg1 : i32, i32
  }
  func.func @transform_1(%arg0: i32, %arg1: i32) -> (i32, i32) {
    %c0_i32 = arith.constant 0 : i32
    %c0_i32_0 = arith.constant 0 : i32
    return %arg1, %c0_i32 : i32, i32
  }
  func.func @transform_2(%arg0: i32, %arg1: i32) -> (i32, i32) {
    %c0_i32 = arith.constant 0 : i32
    %c0_i32_0 = arith.constant 0 : i32
    %c0_i32_1 = arith.constant 0 : i32
    return %c0_i32, %c0_i32_0 : i32, i32
  }
  func.func @transform_3(%arg0: i32, %arg1: i32) -> (i32, i32) {
    %c0_i32 = arith.constant 0 : i32
    %c0_i32_0 = arith.constant 0 : i32
    return %arg0, %c0_i32 : i32, i32
  }
}

</mosaic_0001>

<bundles_post_ra>
// kernel: tpu_custom_call.1
= control target key start
LH: loop header
LB: loop body
LE: loop exit
PB: predicated region body
PF: predicated region fallthrough
CT: control target
= control target key end

     0   :  { %8 = vsyncpa [#allocation4], 0  ;;  %s336_s0 = inlined_call_operand.hbm [shape: f32[8,32], index: 0, kind: input, shape index: {}]   ;;  %s337_s1 = inlined_call_operand.hbm [shape: f32[32,128], index: 1, kind: input, shape index: {}]   ;;  %s338_s2 = inlined_call_operand.vmem [shape: f32[1,10], index: 2, kind: input, shape index: {}]   ;;  %s339_s3 = inlined_call_operand.hbm [shape: f32[8,10], index: 3, kind: output, shape index: {}]  }
   0x1   :  { %9 = vsyncpa [#allocation7], 0 }
   0x2   :  { %10 = vsyncpa [#allocation5], 0  ;;  %s262_s12 = smov [#allocation3]   ;;  %s263_s14 = smov [#allocation6]  }
   0x3   :  { %s17_s13 = sshll.u32 %s262_s12, 4  ;;  %s26_s15 = sshll.u32 %s263_s14, 4  ;;  %s18_s13 = int_to_ptr.vmem [resolvable:$true] %s17_s13  ;;  %s290_s15 = int_to_ptr.vmem [resolvable:$true] %s26_s15 }
   0x4   :  { %s190_s18 = scalar_lea.hbm %s336_s0, 128 }
   0x5   :  { %p191_p0 = scmp.ne.s32.totalorder %s336_s0, %s190_s18  ;;  %p194_p1 = scmp.lt.u32.totalorder %s190_s18, %s336_s0 }
   0x7   :  { %p196_p2 = pnand %p194_p1, %p191_p0 }
   0x9   :  { %199 = shalt.err (!%p196_p2)
}
   0xa   :  { %s200_s23 = scalar_lea.vmem %s18_s13, 128  ;;  %p205_p4 = scmp.lt.s32.totalorder %s18_s13, %s18_s13 }
   0xb   :  { %p201_p3 = scmp.ne.s32.totalorder %s18_s13, %s200_s23  ;;  %p206_p5 = scmp.lt.s32.totalorder %s200_s23, %s200_s23 }
   0xd   :  { %p207_p6 = por %p206_p5, %p205_p4 }
   0xf   :  { %p208_p7 = pnand %p207_p6, %p201_p3 }
  0x11   :  { %211 = shalt.err (!%p208_p7)
}
  0x12   :  { %20 = dma.hbm_to_vmem [thread:$0]  %s336_s0, 128, %s18_s13, [#allocation4]  }
  0x13   :  { %s212_s28 = scalar_lea.hbm %s337_s1, 512 }
  0x14   :  { %p213_p8 = scmp.ne.s32.totalorder %s337_s1, %s212_s28  ;;  %p216_p9 = scmp.lt.u32.totalorder %s212_s28, %s337_s1 }
  0x16   :  { %p218_p10 = pnand %p216_p9, %p213_p8 }
  0x18   :  { %221 = shalt.err (!%p218_p10)
}
  0x19   :  { %s222_s6 = scalar_lea.vmem %s290_s15, 512  ;;  %p227_p12 = scmp.lt.s32.totalorder %s290_s15, %s290_s15 }
  0x1a   :  { %p223_p11 = scmp.ne.s32.totalorder %s290_s15, %s222_s6  ;;  %p228_p13 = scmp.lt.s32.totalorder %s222_s6, %s222_s6 }
  0x1c   :  { %p229_p0 = por %p228_p13, %p227_p12 }
  0x1e   :  { %p230_p1 = pnand %p229_p0, %p223_p11 }
  0x20   :  { %233 = shalt.err (!%p230_p1)
}
  0x21   :  { %s264_s0 = smov 128   ;;  %s265_s7 = smov 8  }
  0x22   :  { %32 = dma.hbm_to_vmem [thread:$0]  %s337_s1, 512, %s290_s15, [#allocation7], %s264_s0, %s264_s0, %s265_s7  }
  0x23   :  { %256 = dma.done.wait [#allocation4], 128  }
  0x24   :  { %257 = vsyncadd [#allocation4], 4294967168 }
  0x25   :  { %258 = dma.done.wait [#allocation7], 512  }
  0x26   :  { %259 = vsyncadd [#allocation7], 4294966784  ;;  %v266_v0 = vmov 0.0|0.0   ;;  %vm267_vm0 = vmmov 0   ;;  %v268_v1 = vmov 0.0   ;;  %v48_v2 = vld [vmem:[#allocation6] sm:$0xff] }
  0x27   :  { %176 = vmatprep.subr.bf16.mxu0 %v266_v0  ;;  %173 = vmatprep.mubr.msk.f32.mxu0 %vm267_vm0, %v268_v1  ;;  %v49_v3 = vld [vmem:[#allocation6 + $0x8] sm:$0xff]  ;;  %v50_v4 = vld [vmem:[#allocation6 + $0x10] sm:$0xff]  ;;  %v51_v6 = vld [vmem:[#allocation6 + $0x18] sm:$0xff]  ;;  %vm52_vm1 = vcmask 261120   ;;  %s269_s11 = smov [#allocation8]   ;;  %vm140_vm2 = vcmask 80896  }
  0x28   :  { %v177_v5 = vpack.c.bf16 %v49_v3, %v48_v2  ;;  %v180_v7 = vpack.c.bf16 %v51_v6, %v50_v4  ;;  %v47_v8 = vld [vmem:[#allocation3] sm:$0xff]  ;;  %s148_s12 = sshll.u32 %s269_s11, 4  ;;  %s149_s12 = int_to_ptr.vmem [resolvable:$true] %s148_s12 }
  0x29   :  { %v159_v9 = vld [vmem:[%s338_s2] ss:$0 sm:$0xff]  ;;  %s234_s13 = scalar_lea.vmem %s149_s12, 128  ;;  %p239_p3 = scmp.lt.s32.totalorder %s149_s12, %s149_s12 }
  0x2a   :  { %178 = vmatpush3.bf16.msra.mxu0 %v177_v5  ;;  %p235_p2 = scmp.ne.s32.totalorder %s149_s12, %s234_s13  ;;  %p240_p4 = scmp.lt.s32.totalorder %s234_s13, %s234_s13 }
  0x2b   :  { %179 = vmatprep.subr.bf16.mxu0 %v266_v0 }
  0x2c   :  { %p241_p5 = por %p240_p4, %p239_p3 }
  0x2e   :  { %181 = vmatpush3.bf16.msra.mxu0 %v180_v7  ;;  %p242_p6 = pnand %p241_p5, %p235_p2 }
  0x31   :  { %174 = vmatmul.mubr.msk.f32.vlgmr.msra.gmra.mrb[0].mxu0 %vm52_vm1, %v47_v8 }
 0x104   :  { %v122_v10 = vpop.f32.mrb[0].mxu0 }
 0x105   :  { %v139_v11 = vadd.f32 %v159_v9, %v122_v10  ;;  %v175_v12 = vpop.f32.mrb[1].mxu0 }
 0x107   :  { %141 = vst.msk [vmem:[#allocation8] sm:$0xff] %vm140_vm2, %v139_v11 }
 0x108   :  { %245 = shalt.err (!%p242_p6)
}
 0x109   :  { %s246_s16 = scalar_lea.hbm %s339_s3, 128 }
 0x10a   :  { %p247_p7 = scmp.ne.s32.totalorder %s339_s3, %s246_s16  ;;  %p250_p8 = scmp.lt.u32.totalorder %s246_s16, %s339_s3 }
 0x10c   :  { %p252_p9 = pnand %p250_p8, %p247_p7 }
 0x10e   :  { %255 = shalt.err (!%p252_p9)
}
 0x10f   :  { %151 = dma.vmem_to_hbm [thread:$0]  %s149_s12, 128, %s339_s3, [#allocation5]  }
 0x110   :  { %260 = dma.done.wait [#allocation5], 128  }
 0x111   :  { %261 = vsyncadd [#allocation5], 4294967168 }
 0x112   :  { %155 = vsyncpa [#allocation4], 1 }
 0x113   :  { %156 = vsyncpa [#allocation7], 1 }
 0x114   :  { %157 = vsyncpa [#allocation5], 1 }

</bundles_post_ra>
